<compile_context>
chip_gen: v7x
topology: tpu7x:2x2x1
jax: 0.10.0
libtpu: 0.0.40
codegen_flags: <defaults>
</compile_context>

<pallas_src>
import functools

import jax
import jax.numpy as jnp
from jax import lax
from jax.experimental import pallas as pl
from jax.experimental.pallas import tpu as pltpu

KH = KW = 3
PAD = 1


def _edge_masks(H, W, HWp, dtype):
    """(2, HWp) 0/1 masks over the flat spatial dim.

    Row 0 kills taps whose source column is w-1 (dw=-1), row 1 kills dw=+1.
    Vertical out-of-image taps need no mask: they read the pre-zeroed halo of
    the flat-padded staging scratch.  The padded spatial tail (>= H*W) is 0.
    """
    col = jnp.tile(jnp.arange(W), H)                        # (H*W,) column idx
    left = (col >= 1)
    right = (col <= W - 2)
    m = jnp.stack([left, right], axis=0).astype(dtype)      # (2, H*W)
    if HWp > H * W:
        m = jnp.pad(m, ((0, 0), (0, HWp - H * W)))
    return m


def _dwsep_kernel(x_ref, mask_ref, wc_ref, bias_ref, out_ref, spad_ref,
                  *, W, base):
    # x_ref   : (Nb, Cp, HWp)           flat images (Cp = C_in padded to 8)
    # mask_ref: (2, HWp)                left / right column masks
    # wc_ref  : (C_out, KH*KW*Cp)       fused depthwise*pointwise weights
    # bias_ref: (C_out, 1) f32          fused bias  w_pw @ b_dw + b_pw
    # out_ref : (Nb, C_out, HWp)        flat output (lane-dense stores)
    # spad_ref: (Nb, Cp, 2*base + HWp)  flat-padded staging scratch
    Nb, Cp, HWp = x_ref.shape
    op_dtype = wc_ref.dtype

    # Re-zero the halo lanes every step (cheap) instead of once under
    # pl.when(program_id == 0): keeps the kernel correct when the "parallel"
    # batch axis is sharded across v7x's two TensorCores, each with its own
    # scratch instance.  The interior is fully rewritten below.
    zeros_halo = jnp.zeros((Nb, Cp, base), spad_ref.dtype)
    spad_ref[:, :, 0:base] = zeros_halo
    spad_ref[:, :, base + HWp:2 * base + HWp] = zeros_halo

    mask_l = mask_ref[0:1, :]                    # (1, HWp)  source col w-1 ok
    mask_r = mask_ref[1:2, :]                    # (1, HWp)  source col w+1 ok
    wc = wc_ref[...]                             # (C_out, 9*Cp)
    bias = bias_ref[...].astype(jnp.float32)     # (C_out, 1)

    for nb in range(Nb):
        # Stage this image at a 128-aligned lane offset (full-lane store).
        # TODO(synk): DMA HBM->spad directly (memory_space=pl.ANY + manual
        # pltpu.make_async_copy) to remove this VMEM->VMEM staging copy.
        spad_ref[nb, :, base:base + HWp] = x_ref[nb]

        # Stack the 9 statically shifted, edge-masked windows: S[k*Cp + c, :].
        wins = []
        for kh in range(KH):
            for kw in range(KW):
                off = base + (kh - PAD) * W + (kw - PAD)
                win = spad_ref[nb, :, off:off + HWp]         # (Cp, HWp)
                if kw == 0:
                    win = win * mask_l
                elif kw == 2:
                    win = win * mask_r
                # kw == 1: no horizontal shift; vertical out-of-image rows
                # already read zeros from the halo -> mask-free tap.
                wins.append(win.astype(op_dtype))
        s_mat = jnp.concatenate(wins, axis=0)                # (9*Cp, HWp)

        # Fused depthwise+pointwise: one MXU contraction, f32 accumulation.
        acc = jnp.dot(wc, s_mat, preferred_element_type=jnp.float32)
        out_ref[nb] = (acc + bias).astype(out_ref.dtype)     # (C_out, HWp)


def depthwise_separable_conv2d(x, w_dw, b_dw, w_pw, b_pw):
    """x: (N, C_in, H, W); w_dw: (C_in, KH, KW); b_dw: (C_in,);
       w_pw: (C_out, C_in); b_pw: (C_out,).  Returns (N, C_out, H, W)."""
    N, C_in, H, W = x.shape
    C_out = w_pw.shape[0]
    HW = H * W
    HWp = -(-HW // 128) * 128                   # lane-dense spatial dim
    Cp = -(-C_in // 8) * 8                      # sublane-full channel dim
    f32 = jnp.float32

    # bf16 inputs -> bf16 MXU operands (f32 accumulation); f32 stays f32.
    op_dtype = jnp.bfloat16 if x.dtype == jnp.bfloat16 else f32

    # Fold the 1x1 pointwise into the 3x3 depthwise taps (wrapper-side, tiny):
    #   wc[o, k*Cp + c] = w_pw[o, c] * w_dw[c, k];  bias = w_pw @ b_dw + b_pw.
    wdw2 = w_dw.reshape(C_in, KH * KW).astype(f32)
    wc = jnp.einsum('oc,ck->okc', w_pw.astype(f32), wdw2)    # (C_out, 9, C_in)
    wc = jnp.pad(wc, ((0, 0), (0, 0), (0, Cp - C_in)))
    wc = wc.reshape(C_out, KH * KW * Cp).astype(op_dtype)
    bias = (w_pw.astype(f32) @ b_dw.astype(f32)
            + b_pw.astype(f32)).reshape(C_out, 1)

    masks = _edge_masks(H, W, HWp, op_dtype)                 # (2, HWp)

    # Flat, lane-dense input; zero-pad channels to 8 and the spatial tail to a
    # multiple of 128 (padded channels hit zero weight columns; the padded
    # spatial tail is sliced off after the call).
    x_flat = x.reshape(N, C_in, HW)
    if Cp != C_in or HWp != HW:
        x_flat = jnp.pad(x_flat, ((0, 0), (0, Cp - C_in), (0, HWp - HW)))

    # Flat-padded staging scratch geometry: interior starts at a 128-aligned
    # lane offset; leading/trailing halos (>= W+1 lanes) absorb vertical taps.
    halo = PAD * (W + 1)
    base = -(-halo // 128) * 128
    pad_w = 2 * base + HWp

    # VMEM-aware batch-block (Nb) selection: keep the per-step footprint under
    # budget AND keep >= min(N, 4) grid steps (pipelining + both v7x cores).
    isz = x.dtype.itemsize
    osz = jnp.dtype(op_dtype).itemsize
    const_bytes = (2 * masks.size * osz + 2 * wc.size * osz + 2 * C_out * 4
                   + KH * KW * Cp * HWp * osz)       # stacked-window live set
    def step_bytes(nb):
        return (2 * nb * Cp * HWp * isz              # x block, double-buffered
                + 2 * nb * C_out * HWp * isz         # out block, double-buffered
                + nb * Cp * pad_w * isz              # staging scratch
                + const_bytes)
    budget = 40 * 1024 * 1024
    min_steps = min(N, 4)
    Nb = 1
    for nb in sorted((d for d in range(1, N + 1) if N % d == 0), reverse=True):
        if N // nb >= min_steps and step_bytes(nb) <= budget:
            Nb = nb
            break
    # TODO(synk): if even Nb=1 exceeds the budget (very large C*H*W), add a
    # second (spatial-tile) grid axis instead of relying on one huge block.

    kernel = functools.partial(_dwsep_kernel, W=W, base=base)

    out_flat = pl.pallas_call(
        kernel,
        out_shape=jax.ShapeDtypeStruct((N, C_out, HWp), x.dtype),
        grid_spec=pltpu.PrefetchScalarGridSpec(
            num_scalar_prefetch=0,
            grid=(N // Nb,),
            in_specs=[
                pl.BlockSpec((Nb, Cp, HWp), lambda b: (b, 0, 0)),
                pl.BlockSpec((2, HWp), lambda b: (0, 0)),
                pl.BlockSpec((C_out, KH * KW * Cp), lambda b: (0, 0)),
                pl.BlockSpec((C_out, 1), lambda b: (0, 0)),
            ],
            out_specs=pl.BlockSpec((Nb, C_out, HWp), lambda b: (b, 0, 0)),
            scratch_shapes=[pltpu.VMEM((Nb, Cp, pad_w), x.dtype)],
        ),
        compiler_params=pltpu.CompilerParams(
            dimension_semantics=("parallel",),
            vmem_limit_bytes=48 * 1024 * 1024),
    )(x_flat, masks, wc, bias)

    if HWp != HW:
        out_flat = out_flat[:, :, :HW]
    return out_flat.reshape(N, C_out, H, W)


def reference(x, w_dw, b_dw, w_pw, b_pw):
    """Pure-JAX reference mirroring the PyTorch module (NCHW, OIHW)."""
    N, C_in, H, W = x.shape
    C_out = w_pw.shape[0]
    y = lax.conv_general_dilated(
        x, w_dw.reshape(C_in, 1, KH, KW),
        window_strides=(1, 1), padding=((PAD, PAD), (PAD, PAD)),
        dimension_numbers=("NCHW", "OIHW", "NCHW"),
        feature_group_count=C_in)
    y = y + b_dw.reshape(1, C_in, 1, 1)
    z = lax.conv_general_dilated(
        y, w_pw.reshape(C_out, C_in, 1, 1),
        window_strides=(1, 1), padding="VALID",
        dimension_numbers=("NCHW", "OIHW", "NCHW"))
    return z + b_pw.reshape(1, C_out, 1, 1)


if __name__ == "__main__":
    N, C_in, C_out, H, W = 2, 4, 8, 16, 16

    key = jax.random.PRNGKey(0)
    k1, k2, k3, k4, k5 = jax.random.split(key, 5)

    x = jax.random.normal(k1, (N, C_in, H, W), jnp.float32)
    # MSRA-like scales (c2_msra_fill); biases made nonzero (PyTorch init zeros
    # them) to exercise the bias path.
    w_dw = jax.random.normal(k2, (C_in, KH, KW), jnp.float32) * (2.0 / (KH * KW)) ** 0.5
    b_dw = jax.random.normal(k3, (C_in,), jnp.float32) * 0.1
    w_pw = jax.random.normal(k4, (C_out, C_in), jnp.float32) * (2.0 / C_out) ** 0.5
    b_pw = jax.random.normal(k5, (C_out,), jnp.float32) * 0.1

    out = depthwise_separable_conv2d(x, w_dw, b_dw, w_pw, b_pw)
    out = jax.block_until_ready(out)

    ref = reference(x, w_dw, b_dw, w_pw, b_pw)
    assert out.shape == (N, C_out, H, W)
    # Tolerance is modestly relaxed vs 1e-4: the fused (w_pw * w_dw) weights
    # reassociate the f32 multiply-accumulates relative to the two-conv ref.
    assert jnp.allclose(out, ref, atol=1e-3, rtol=1e-3), "mismatch vs JAX reference"
    print("KERNEL_OK")
</pallas_src>

<mosaic_0001>
module attributes {stable_mosaic.version = 11 : i64} {
  func.func @_dwsep_kernel(%arg0: i32, %arg1: memref<1x8x256xf32, #tpu.memory_space<vmem>>, %arg2: memref<2x256xf32, #tpu.memory_space<vmem>>, %arg3: memref<8x72xf32, #tpu.memory_space<vmem>>, %arg4: memref<8x1xf32, #tpu.memory_space<vmem>>, %arg5: memref<1x8x256xf32, #tpu.memory_space<vmem>>, %arg6: memref<1x8x512xf32, #tpu.memory_space<vmem>>) attributes {dimension_semantics = [#tpu.dimension_semantics<parallel>], iteration_bounds = array<i64: 2>, scalar_prefetch = 0 : i64, scratch_operands = 1 : i64, tpu.core_type = #tpu.core_type<tc>, window_params = [{transform_indices = @transform_0, window_bounds = array<i64: 1, 8, 256>}, {pipeline_mode = #tpu.pipeline_mode<synchronous>, transform_indices = @transform_1, window_bounds = array<i64: 2, 256>}, {pipeline_mode = #tpu.pipeline_mode<synchronous>, transform_indices = @transform_2, window_bounds = array<i64: 8, 72>}, {pipeline_mode = #tpu.pipeline_mode<synchronous>, transform_indices = @transform_3, window_bounds = array<i64: 8, 1>}, {transform_indices = @transform_4, window_bounds = array<i64: 1, 8, 256>}]} {
    %cst = arith.constant 0.000000e+00 : f32
    %0 = vector.broadcast %cst : f32 to vector<1x8x128xf32>
    %c0 = arith.constant 0 : index
    %c0_0 = arith.constant 0 : index
    %c0_1 = arith.constant 0 : index
    %1 = vector.load %arg6[%c0, %c0_0, %c0_1] : memref<1x8x512xf32, #tpu.memory_space<vmem>>, vector<1x8x128xf32>
    tpu.vector_store %arg6[%c0, %c0_0, %c0_1], %0 {strides = array<i32>} : memref<1x8x512xf32, #tpu.memory_space<vmem>>, vector<1x8x128xf32>,
    %c0_2 = arith.constant 0 : index
    %c0_3 = arith.constant 0 : index
    %c384 = arith.constant 384 : index
    %2 = vector.load %arg6[%c0_2, %c0_3, %c384] : memref<1x8x512xf32, #tpu.memory_space<vmem>>, vector<1x8x128xf32>
    tpu.vector_store %arg6[%c0_2, %c0_3, %c384], %0 {strides = array<i32>} : memref<1x8x512xf32, #tpu.memory_space<vmem>>, vector<1x8x128xf32>,
    %c0_4 = arith.constant 0 : index
    %c0_5 = arith.constant 0 : index
    %3 = vector.load %arg2[%c0_4, %c0_5] : memref<2x256xf32, #tpu.memory_space<vmem>>, vector<1x256xf32>
    %c1 = arith.constant 1 : index
    %c0_6 = arith.constant 0 : index
    %4 = vector.load %arg2[%c1, %c0_6] : memref<2x256xf32, #tpu.memory_space<vmem>>, vector<1x256xf32>
    %c0_7 = arith.constant 0 : index
    %c0_8 = arith.constant 0 : index
    %5 = vector.load %arg3[%c0_7, %c0_8] : memref<8x72xf32, #tpu.memory_space<vmem>>, vector<8x72xf32>
    %c0_9 = arith.constant 0 : index
    %c0_10 = arith.constant 0 : index
    %6 = vector.load %arg4[%c0_9, %c0_10] : memref<8x1xf32, #tpu.memory_space<vmem>>, vector<8x1xf32>
    %c0_11 = arith.constant 0 : index
    %c0_12 = arith.constant 0 : index
    %c0_13 = arith.constant 0 : index
    %7 = vector.load %arg1[%c0_11, %c0_12, %c0_13] : memref<1x8x256xf32, #tpu.memory_space<vmem>>, vector<1x8x256xf32>
    %8 = vector.shape_cast %7 : vector<1x8x256xf32> to vector<8x256xf32>
    %c0_14 = arith.constant 0 : index
    %c0_15 = arith.constant 0 : index
    %c128 = arith.constant 128 : index
    %9 = vector.load %arg6[%c0_14, %c0_15, %c128] : memref<1x8x512xf32, #tpu.memory_space<vmem>>, vector<1x8x256xf32>
    %10 = vector.shape_cast %9 : vector<1x8x256xf32> to vector<8x256xf32>
    %11 = vector.shape_cast %8 : vector<8x256xf32> to vector<1x8x256xf32>
    tpu.vector_store %arg6[%c0_14, %c0_15, %c128], %11 {strides = array<i32>} : memref<1x8x512xf32, #tpu.memory_space<vmem>>, vector<1x8x256xf32>,
    %c0_16 = arith.constant 0 : index
    %c0_17 = arith.constant 0 : index
    %c111 = arith.constant 111 : index
    %12 = vector.load %arg6[%c0_16, %c0_17, %c111] : memref<1x8x512xf32, #tpu.memory_space<vmem>>, vector<1x8x256xf32>
    %13 = vector.shape_cast %12 : vector<1x8x256xf32> to vector<8x256xf32>
    %14 = vector.broadcast %3 : vector<1x256xf32> to vector<8x256xf32>
    %15 = arith.mulf %13, %14 : vector<8x256xf32>
    %c0_18 = arith.constant 0 : index
    %c0_19 = arith.constant 0 : index
    %c112 = arith.constant 112 : index
    %16 = vector.load %arg6[%c0_18, %c0_19, %c112] : memref<1x8x512xf32, #tpu.memory_space<vmem>>, vector<1x8x256xf32>
    %17 = vector.shape_cast %16 : vector<1x8x256xf32> to vector<8x256xf32>
    %c0_20 = arith.constant 0 : index
    %c0_21 = arith.constant 0 : index
    %c113 = arith.constant 113 : index
    %18 = vector.load %arg6[%c0_20, %c0_21, %c113] : memref<1x8x512xf32, #tpu.memory_space<vmem>>, vector<1x8x256xf32>
    %19 = vector.shape_cast %18 : vector<1x8x256xf32> to vector<8x256xf32>
    %20 = vector.broadcast %4 : vector<1x256xf32> to vector<8x256xf32>
    %21 = arith.mulf %19, %20 : vector<8x256xf32>
    %c0_22 = arith.constant 0 : index
    %c0_23 = arith.constant 0 : index
    %c127 = arith.constant 127 : index
    %22 = vector.load %arg6[%c0_22, %c0_23, %c127] : memref<1x8x512xf32, #tpu.memory_space<vmem>>, vector<1x8x256xf32>
    %23 = vector.shape_cast %22 : vector<1x8x256xf32> to vector<8x256xf32>
    %24 = vector.broadcast %3 : vector<1x256xf32> to vector<8x256xf32>
    %25 = arith.mulf %23, %24 : vector<8x256xf32>
    %c0_24 = arith.constant 0 : index
    %c0_25 = arith.constant 0 : index
    %c128_26 = arith.constant 128 : index
    %26 = vector.load %arg6[%c0_24, %c0_25, %c128_26] : memref<1x8x512xf32, #tpu.memory_space<vmem>>, vector<1x8x256xf32>
    %27 = vector.shape_cast %26 : vector<1x8x256xf32> to vector<8x256xf32>
    %c0_27 = arith.constant 0 : index
    %c0_28 = arith.constant 0 : index
    %c129 = arith.constant 129 : index
    %28 = vector.load %arg6[%c0_27, %c0_28, %c129] : memref<1x8x512xf32, #tpu.memory_space<vmem>>, vector<1x8x256xf32>
    %29 = vector.shape_cast %28 : vector<1x8x256xf32> to vector<8x256xf32>
    %30 = vector.broadcast %4 : vector<1x256xf32> to vector<8x256xf32>
    %31 = arith.mulf %29, %30 : vector<8x256xf32>
    %c0_29 = arith.constant 0 : index
    %c0_30 = arith.constant 0 : index
    %c143 = arith.constant 143 : index
    %32 = vector.load %arg6[%c0_29, %c0_30, %c143] : memref<1x8x512xf32, #tpu.memory_space<vmem>>, vector<1x8x256xf32>
    %33 = vector.shape_cast %32 : vector<1x8x256xf32> to vector<8x256xf32>
    %34 = vector.broadcast %3 : vector<1x256xf32> to vector<8x256xf32>
    %35 = arith.mulf %33, %34 : vector<8x256xf32>
    %c0_31 = arith.constant 0 : index
    %c0_32 = arith.constant 0 : index
    %c144 = arith.constant 144 : index
    %36 = vector.load %arg6[%c0_31, %c0_32, %c144] : memref<1x8x512xf32, #tpu.memory_space<vmem>>, vector<1x8x256xf32>
    %37 = vector.shape_cast %36 : vector<1x8x256xf32> to vector<8x256xf32>
    %c0_33 = arith.constant 0 : index
    %c0_34 = arith.constant 0 : index
    %c145 = arith.constant 145 : index
    %38 = vector.load %arg6[%c0_33, %c0_34, %c145] : memref<1x8x512xf32, #tpu.memory_space<vmem>>, vector<1x8x256xf32>
    %39 = vector.shape_cast %38 : vector<1x8x256xf32> to vector<8x256xf32>
    %40 = vector.broadcast %4 : vector<1x256xf32> to vector<8x256xf32>
    %41 = arith.mulf %39, %40 : vector<8x256xf32>
    %42 = tpu.concatenate %15, %17, %21, %25, %27, %31, %35, %37, %41 in 0 : vector<8x256xf32>, vector<8x256xf32>, vector<8x256xf32>, vector<8x256xf32>, vector<8x256xf32>, vector<8x256xf32>, vector<8x256xf32>, vector<8x256xf32>, vector<8x256xf32> -> vector<72x256xf32>
    %cst_35 = arith.constant dense<0.000000e+00> : vector<8x256xf32>
    %43 = tpu.matmul %5, %42, %cst_35 {dimension_numbers = #tpu.dot_dimension_numbers<[1], [0], [0], [1], [0, 0, 1, 1], [], []>} : vector<8x72xf32>, vector<72x256xf32>, vector<8x256xf32> -> vector<8x256xf32>
    %44 = vector.broadcast %6 : vector<8x1xf32> to vector<8x256xf32>
    %45 = arith.addf %43, %44 : vector<8x256xf32>
    %c0_36 = arith.constant 0 : index
    %c0_37 = arith.constant 0 : index
    %c0_38 = arith.constant 0 : index
    %46 = vector.load %arg5[%c0_36, %c0_37, %c0_38] : memref<1x8x256xf32, #tpu.memory_space<vmem>>, vector<1x8x256xf32>
    %47 = vector.shape_cast %46 : vector<1x8x256xf32> to vector<8x256xf32>
    %48 = vector.shape_cast %45 : vector<8x256xf32> to vector<1x8x256xf32>
    tpu.vector_store %arg5[%c0_36, %c0_37, %c0_38], %48 {strides = array<i32>} : memref<1x8x256xf32, #tpu.memory_space<vmem>>, vector<1x8x256xf32>,
    return
  }
  func.func @transform_0(%arg0: i32) -> (i32, i32, i32) {
    %c0_i32 = arith.constant 0 : i32
    %c0_i32_0 = arith.constant 0 : i32
    %c0_i32_1 = arith.constant 0 : i32
    return %arg0, %c0_i32, %c0_i32_0 : i32, i32, i32
  }
  func.func @transform_1(%arg0: i32) -> (i32, i32) {
    %c0_i32 = arith.constant 0 : i32
    %c0_i32_0 = arith.constant 0 : i32
    %c0_i32_1 = arith.constant 0 : i32
    return %c0_i32, %c0_i32_0 : i32, i32
  }
  func.func @transform_2(%arg0: i32) -> (i32, i32) {
    %c0_i32 = arith.constant 0 : i32
    %c0_i32_0 = arith.constant 0 : i32
    %c0_i32_1 = arith.constant 0 : i32
    return %c0_i32, %c0_i32_0 : i32, i32
  }
  func.func @transform_3(%arg0: i32) -> (i32, i32) {
    %c0_i32 = arith.constant 0 : i32
    %c0_i32_0 = arith.constant 0 : i32
    %c0_i32_1 = arith.constant 0 : i32
    return %c0_i32, %c0_i32_0 : i32, i32
  }
  func.func @transform_4(%arg0: i32) -> (i32, i32, i32) {
    %c0_i32 = arith.constant 0 : i32
    %c0_i32_0 = arith.constant 0 : i32
    %c0_i32_1 = arith.constant 0 : i32
    return %arg0, %c0_i32, %c0_i32_0 : i32, i32, i32
  }
}

</mosaic_0001>

<bundles_post_ra>
// kernel: tpu_custom_call.1
= control target key start
LH: loop header
LB: loop body
LE: loop exit
PB: predicated region body
PF: predicated region fallthrough
CT: control target
= control target key end

     0   :  { %9 = vsyncpa [#allocation4], 0  ;;  %s1250_s0 = inlined_call_operand.hbm [shape: f32[2,8,256], index: 0, kind: input, shape index: {}]   ;;  %s1251_s1 = inlined_call_operand.vmem [shape: f32[2,256], index: 1, kind: input, shape index: {}]   ;;  %s1252_s2 = inlined_call_operand.vmem [shape: f32[8,72], index: 2, kind: input, shape index: {}]   ;;  %s1253_s3 = inlined_call_operand.vmem [shape: f32[8,1], index: 3, kind: input, shape index: {}]   ;;  %s1254_s4 = inlined_call_operand.hbm [shape: f32[2,8,256], index: 4, kind: output, shape index: {}]  }
   0x1   :  { %11 = vsyncpa [#allocation4 + $0x1], 0 }
   0x2   :  { %12 = vsyncpa [#allocation5], 0 }
   0x3   :  { %14 = vsyncpa [#allocation5 + $0x1], 0  ;;  %s999_s15 = smov 0   ;;  %s1001_s16 = smov 0  }
   0x4   :  { %s1003_s17 = smov 0   ;;  %s1005_s18 = smov 0  }
   0x5 LB: > { %s1020_s19 = sadd.s32 4294967295, %s956_s18   ;;  %s669_s20 = sadd.s32 4294967294, %s956_s18   ;;  %s956_s18 = sphi %s1005_s18, %s1269_s18   ;;  %s952_s17 = sphi %s1003_s17, %s1268_s17   ;;  %s948_s16 = sphi %s1001_s16, %s1267_s16   ;;  %s944_s15 = sphi %s999_s15, %s1266_s15  }
   0x6   : > { %s1024_s21 = sadd.s32 1, %s956_s18   ;;  %s27_s22 = sadd.s32 1, %s952_s17 }
   0x7   : > { %s24_s23 = ssub.s32 %s956_s18, %s1024_s21  ;;  %p34_p0 = scmp.ne.s32.totalorder %s952_s17, %s948_s16 }
   0x8   : > { %p25_p1 = scmp.eq.s32.totalorder %s24_s23, 0  ;;  %p35_p2 = scmp.eq.s32.totalorder %s956_s18, 0 }
   0x9   : > { %p40_p3 = scmp.ne.s32.totalorder %s948_s16, %s944_s15  ;;  %p41_p4 = scmp.eq.s32.totalorder %s1020_s19, 0 }
   0xa   : > { %s1036_s24 = scalar_select %p25_p1, %s952_s17, %s27_s22  }
   0xb   : > { %p1038_p5 = por %p35_p2, %p34_p0  ;;  %p1042_p6 = por %p41_p4, %p40_p3 }
   0xc   : > { %p127_p7 = scmp.eq.s32.totalorder %s1020_s19, 1  ;;  %p133_p8 = scmp.eq.s32.totalorder %s669_s20, 1 }
   0xd   : > { %p715_p10 = scmp.lt.s32.totalorder %s956_s18, 2  ;;  %s162_s29 = sand.u32 1, %s952_s17  }
   0xe   : > { %p1049_p11 = por %p127_p7, %p34_p0  ;;  %p1053_p12 = por %p133_p8, %p40_p3 }
   0xf   : > { %s685_s30 = sshll.u32 %s956_s18, 8  ;;  %s672_s5 = sshll.u32 %s162_s29, 4 }
  0x10   : > { %s1258_s27 = scalar_select %p1049_p11, 1, 0 }
  0x11   : > { %s1259_s28 = scalar_select %p1053_p12, 1, 0 }
  0x12   : > { %s1062_s8 = scalar_lea.hbm %s1250_s0, %s685_s30  ;;  %s166_s9 = scalar_lea.vmem [#allocation3], %s672_s5 }
  0x13   : > { %s174_s10 = sshll.u32 %s166_s9, 4  ;;  %p1066_p13 = pnand %p715_p10, %p1038_p5  ;;  %s1070_s10 = int_to_ptr.vmem [resolvable:$true] %s174_s10 }
  0x14   : > { %s163_s12 = scalar_lea.sflag [#allocation4], %s162_s29  ;;  %s860_s13 = scalar_lea.hbm %s1062_s8, 256 }
  0x15   : > { %p861_p2 = scmp.ne.s32.totalorder %s1062_s8, %s860_s13  ;;  %p862_p3 = pneg %p1066_p13 }
  0x16   : > { %s865_s22 = scalar_lea.hbm %s1250_s0, 512  ;;  %p866_p5 = scmp.lt.u32.totalorder %s1062_s8, %s1250_s0 }
  0x17   : > { %p863_p4 = pnand %p862_p3, %p861_p2  ;;  %p867_p8 = scmp.lt.u32.totalorder %s865_s22, %s860_s13 }
  0x18   : > { %p869_p9 = scmp.lt.u32.totalorder %s860_s13, %s1062_s8 }
  0x19   : > { %p864_p7 = pneg %p863_p4  ;;  %p868_p10 = por %p867_p8, %p866_p5 }
  0x1b   : > { %p870_p0 = por %p869_p9, %p868_p10 }
  0x1d   : > { %p871_p1 = pnand %p870_p0, %p864_p7 }
  0x1f   : > { %874 = shalt.err (!%p871_p1)
}
  0x20   : > { %s875_s29 = scalar_lea.vmem %s1070_s10, 256  ;;  %s958_s30 = smov [#allocation3]  }
  0x21   : > { %p876_p2 = scmp.ne.s32.totalorder %s1070_s10, %s875_s29  ;;  %s880_s5 = sshll.u32 %s958_s30, 4  ;;  %s881_s5 = int_to_ptr.vmem [resolvable:$false] %s880_s5 }
  0x22   : > { %s882_s6 = scalar_lea.vmem %s881_s5, 512  ;;  %p883_p11 = scmp.lt.s32.totalorder %s1070_s10, %s881_s5 }
  0x23   : > { %p878_p4 = pnand %p876_p2, %p862_p3  ;;  %p884_p5 = scmp.lt.s32.totalorder %s882_s6, %s875_s29 }
  0x25   : > { %p879_p12 = pneg %p878_p4  ;;  %p885_p8 = por %p884_p5, %p883_p11 }
  0x27   : > { %p886_p9 = pnand %p885_p8, %p879_p12 }
  0x29   : > { %889 = shalt.err (!%p886_p9)
}
  0x2a   : > { %710 = dma.hbm_to_vmem [thread:$0]  (!%p1066_p13), %s1062_s8, 256, %s1070_s10, %s163_s12  }
  0x2b   : > { %p1261_p0 = scmp.lt.s32.totalorder %s956_s18, 3  ;;  %p1262_p1 = scmp.ge.s32.totalorder %s956_s18, 1 }
  0x2d   : > { %p180_p3 = pnand %p1262_p1, %p1261_p0 }
  0x2e   : > { %s1104_s7 = sand.u32 (!%p180_p3), 1, %s948_s16  }
  0x2f   : > { %183 = sbr.rel (%p180_p3) target bundleno = 682 (0x2aa), region = 36  ;;  %s676_s9 = sshll.u32 (!%p180_p3), %s1104_s7, 4 }
  0x30   : > { %s186_s13 = scalar_lea.sflag (!%p180_p3), [#allocation4], %s1104_s7  ;;  %s1110_s11 = scalar_lea.vmem (!%p180_p3), [#allocation3], %s676_s9 }
  0x36   : > { %935 = dma.done.wait (%p1042_p6), %s186_s13, 256  }
  0x37   : > { %937 = vsyncadd (%p1042_p6), %s186_s13, 4294967040  ;;  %v229_v0 = vlaneseq  ;;  %v959_v1 = vmov 0.0   ;;  %v678_v5 = vld [vmem:[%s1251_s1 + $0x1] ss:$2 sm:$0x3]  ;;  %s960_s20 = smov 113  }
  0x38   : > { %575 = vmatprep.mubr.f32.mxu0 %v959_v1  ;;  %v216_v6 = vld [vmem:[%s1251_s1] ss:$2 sm:$0x3]  ;;  %s961_s26 = smov 127   ;;  %s962_s22 = smov 1   ;;  %v1129_v12 = vld [vmem:[%s1110_s11 + $0x8] sm:$0xff] }
  0x39   : > { %v230_v2 = vshrl.u32 %v229_v0, 7  ;;  %s963_s23 = smov 15   ;;  %s964_s25 = smov 17   ;;  %v1126_v11 = vld [vmem:[%s1110_s11] sm:$0xff]  ;;  %vm274_vm0 = vcmask 1039360   ;;  %vm262_vm1 = vcmask 924672  }
  0x3a   : > { %s965_s29 = smov 111   ;;  %v763_v13 = vpack.i.bf16 %v1129_v12, %v1126_v11  ;;  %s966_s30 = smov 112   ;;  %vm289_vm2 = vcmask 7168   ;;  %vm301_vm3 = vcmask 121856   ;;  %vm313_vm4 = vcmask 138240  }
  0x3b   : > { %v231_v3 = vsub.s32 0, %v230_v2  ;;  %v235_v4 = vsub.s32 1, %v230_v2  ;;  %s967_s5 = smov 126   ;;  %s968_s6 = smov 95   ;;  %vm241_vm5 = vcmask 908288   ;;  %vm353_vm6 = vcmask 916480  }
  0x3c   : > { %s969_s13 = smov 110   ;;  %s970_s11 = smov 96   ;;  %vm341_vm7 = vcmask 1031168   ;;  %vm394_vm8 = vcmask 777216   ;;  %vm370_vm9 = vcmask 900096   ;;  %vm382_vm10 = vcmask 785408  }
  0x3d   : > { %v253_v7 = vrot.slane %v678_v5, %v231_v3  ;;  %v232_v8 = vrot.slane %v216_v6, %v231_v3  ;;  %v257_v9 = vrot.slane %v678_v5, %v235_v4  ;;  %v236_v10 = vrot.slane %v216_v6, %v235_v4  ;;  %s971_s8 = smov 94   ;;  %p1263_p11 = scmp.ne.s32.totalorder %s1258_s27, 0 }
  0x3e   : > { %vm406_vm11 = vcmask 769024   ;;  %vm507_vm12 = vcmask 588800  }
  0x3f   : > { %258 = vrot.lane.b32.xlu0 %v253_v7, %s960_s20  ;;  %270 = vrot.lane.b32.xlu1 %v232_v8, %s961_s26 }
  0x43   : > { %260 = vrot.lane.b32.xlu0 %v257_v9, %s960_s20  ;;  %272 = vrot.lane.b32.xlu1 %v236_v10, %s961_s26 }
  0x47   : > { %285 = vrot.lane.b32.xlu0 %v253_v7, %s962_s22  ;;  %287 = vrot.lane.b32.xlu1 %v257_v9, %s962_s22  ;;  %s213_s22 = scalar_lea.vmem [#allocation6], %s676_s9  ;;  %s973_s9 = smov [#allocation6]  }
  0x4b   : > { %297 = vrot.lane.b32.xlu0 %v232_v8, %s963_s23  ;;  %299 = vrot.lane.b32.xlu1 %v236_v10, %s963_s23  ;;  %s599_s23 = sshll.u32 %s213_s22, 4  ;;  %s1208_s23 = int_to_ptr.vmem [resolvable:$true] %s599_s23 }
  0x4f   : > { %309 = vrot.lane.b32.xlu0 %v253_v7, %s964_s25  ;;  %311 = vrot.lane.b32.xlu1 %v257_v9, %s964_s25 }
  0x53   : > { %237 = vrot.lane.b32.xlu0 %v232_v8, %s965_s29  ;;  %239 = vrot.lane.b32.xlu1 %v236_v10, %s965_s29 }
  0x57   : > { %764 = vrot.lane.b32.xlu0 %v763_v13, %s961_s26  ;;  %324 = vrot.lane.b32.xlu1 %v959_v1, %s961_s26  ;;  %s686_s26 = sshll.u32 %s1020_s19, 8  ;;  %s585_s19 = scalar_lea.sflag [#allocation5], %s1104_s7 }
  0x5b   : > { %769 = vrot.lane.b32.xlu0 %v763_v13, %s965_s29 }
  0xb1   : > { %v259_v14 = vpop.permute.xlu0 %258  ;;  %v271_v15 = vpop.permute.xlu1 %270 }
  0xb2   : > { %v267_v16 = vmul.f32 0.0, %v259_v14  ;;  %v279_v17 = vmul.f32 0.0, %v271_v15 }
  0xb4   : > { %347 = vrot.lane.b32.xlu1 %v279_v17, %s966_s30  ;;  %335 = vrot.lane.b32.xlu0 %v267_v16, %s967_s5 }
  0xb5   : > { %v261_v18 = vpop.permute.xlu0 %260  ;;  %v273_v19 = vpop.permute.xlu1 %272 }
  0xb6   : > { %v275_v20 = vsel %vm274_vm0, %v271_v15, %v273_v19  ;;  %v281_v21 = vmul.f32 %v273_v19, %v1129_v12  ;;  %v263_v22 = vsel %vm262_vm1, %v259_v14, %v261_v18  ;;  %v269_v24 = vmul.f32 %v261_v18, %v1129_v12 }
  0xb7   : > { %v280_v23 = vmul.f32 %v275_v20, %v1126_v11  ;;  %v268_v28 = vmul.f32 %v263_v22, %v1126_v11 }
  0xb8   : > { %779 = vrot.lane.b32.xlu1 %v763_v13, %s968_s6 }
  0xb9   : > { %v783_v25 = vpack.i.bf16 %v281_v21, %v280_v23  ;;  %v286_v26 = vpop.permute.xlu0 %285  ;;  %v288_v27 = vpop.permute.xlu1 %287  ;;  %v773_v36 = vpack.i.bf16 %v269_v24, %v268_v28 }
  0xba   : > { %v294_v29 = vmul.f32 %v286_v26, %v1126_v11  ;;  %v290_v30 = vsel %vm289_vm2, %v286_v26, %v288_v27  ;;  %v296_v31 = vmul.f32 0.0, %v288_v27 }
  0xbb   : > { %v295_v32 = vmul.f32 %v290_v30, %v1129_v12 }
  0xbc   : > { %784 = vrot.lane.b32.xlu1 %v783_v25, %s966_s30  ;;  %368 = vrot.lane.b32.xlu0 %v296_v31, %s969_s13  ;;  %s1206_s30 = scalar_lea.hbm %s1254_s4, %s686_s26 }
  0xbd   : > { %v298_v33 = vpop.permute.xlu0 %297  ;;  %v300_v34 = vpop.permute.xlu1 %299  ;;  %v788_v35 = vpack.i.bf16 %v295_v32, %v294_v29 }
  0xbe   : > { %v306_v37 = vmul.f32 %v298_v33, %v1126_v11  ;;  %v302_v38 = vsel %vm301_vm3, %v298_v33, %v300_v34  ;;  %v308_v40 = vmul.f32 0.0, %v300_v34 }
  0xbf   : > { %v307_v39 = vmul.f32 %v302_v38, %v1129_v12 }
  0xc0   : > { %774 = vrot.lane.b32.xlu0 %v773_v36, %s967_s5  ;;  %789 = vrot.lane.b32.xlu1 %v788_v35, %s969_s13  ;;  %s890_s5 = scalar_lea.vmem %s1208_s23, 256 }
  0xc1   : > { %v793_v41 = vpack.i.bf16 %v307_v39, %v306_v37  ;;  %v310_v42 = vpop.permute.xlu0 %309  ;;  %v312_v43 = vpop.permute.xlu1 %311  ;;  %p891_p6 = scmp.ne.s32.totalorder %s1208_s23, %s890_s5 }
  0xc2   : > { %v318_v44 = vmul.f32 %v310_v42, %v1126_v11  ;;  %v314_v45 = vsel %vm313_vm4, %v310_v42, %v312_v43  ;;  %v320_v49 = vmul.f32 0.0, %v312_v43 }
  0xc3   : > { %v319_v48 = vmul.f32 %v314_v45, %v1129_v12  ;;  %p892_p12 = pnand %p891_p6, %p1263_p11 }
  0xc4   : > { %380 = vrot.lane.b32.xlu0 %v308_v40, %s970_s11  ;;  %794 = vrot.lane.b32.xlu1 %v793_v41, %s970_s11 }
  0xc5   : > { %v238_v46 = vpop.permute.xlu0 %237  ;;  %v240_v47 = vpop.permute.xlu1 %239  ;;  %p893_p13 = pneg %p892_p12 }
  0xc6   : > { %v246_v50 = vmul.f32 0.0, %v238_v46  ;;  %v242_v57 = vsel %vm241_vm5, %v238_v46, %v240_v47  ;;  %v248_v0 = vmul.f32 %v240_v47, %v1129_v12 }
  0xc7   : > { %v247_v63 = vmul.f32 %v242_v57, %v1126_v11 }
  0xc8   : > { %392 = vrot.lane.b32.xlu0 %v959_v1, %s968_s6  ;;  %400 = vrot.lane.b32.xlu1 %v318_v44, %s971_s8  ;;  %s894_s6 = sshll.u32 %s973_s9, 4  ;;  %s895_s6 = int_to_ptr.vmem [resolvable:$false] %s894_s6 }
  0xc9   : > { %v765_v51 = vpop.permute.xlu0 %764  ;;  %v325_v52 = vpop.permute.xlu1 %324  ;;  %v813_v3 = vpack.i.bf16 %v248_v0, %v247_v63  ;;  %s896_s13 = scalar_lea.vmem %s895_s6, 512  ;;  %p897_p7 = scmp.lt.s32.totalorder %s1208_s23, %s895_s6 }
  0xca   : > { %v767_v53 = vunpack.i.h.bf16 %v765_v51  ;;  %v766_v54 = vunpack.i.l.bf16 %v765_v51  ;;  %p898_p10 = scmp.lt.s32.totalorder %s896_s13, %s890_s5 }
  0xcc   : > { %402 = vrot.lane.b32.xlu0 %v319_v48, %s971_s8  ;;  %404 = vrot.lane.b32.xlu1 %v320_v49, %s971_s8  ;;  %v331_v55 = vsel %vm274_vm0, %v766_v54, %v767_v53  ;;  %v330_v56 = vsel %vm274_vm0, %v325_v52, %v766_v54  ;;  %v972_v49 = vmov 0   ;;  %p899_p2 = por %p898_p10, %p897_p7 }
  0xcd   : > { %v798_v58 = vpack.i.bf16 %v767_v53, %v331_v55  ;;  %v803_v59 = vpack.i.bf16 %v330_v56, %v246_v50  ;;  %v770_v60 = vpop.permute.xlu0 %769  ;;  %858 = vset.pattern.permute.xlu1 %v972_v49  ;;  %859 = vset.pattern.permute.xlu0 %v972_v49  ;;  %v219_v49 = vld [vmem:[%s1252_s2] sm:$0xff] }
  0xce   : > { %v772_v61 = vunpack.i.h.bf16 %v770_v60  ;;  %v771_v62 = vunpack.i.l.bf16 %v770_v60  ;;  %p900_p4 = pnand %p899_p2, %p893_p13 }
  0xd0   : > { %v360_v1 = vsel %vm241_vm5, %v771_v62, %v772_v61  ;;  %804 = vrot.lane.b32.xlu0 %v803_v59, %s964_s25  ;;  %799 = vrot.lane.b32.xlu1 %v798_v58, %s964_s25 }
  0xd1   : > { %v808_v2 = vpack.i.bf16 %v772_v61, %v360_v1 }
  0xd4   : > { %809 = vrot.lane.b32.xlu0 %v808_v2, %s964_s25 }
  0xd8   : > { %814 = vrot.lane.b32.xlu0 %v813_v3, %s964_s25 }
 0x126   : > { %v348_v4 = vpop.permute.xlu1 %347  ;;  %v336_v5 = vpop.permute.xlu0 %335 }
 0x12a   : > { %v780_v6 = vpop.permute.xlu1 %779 }
 0x12b   : > { %v782_v20 = vunpack.i.h.bf16 %v780_v6  ;;  %v781_v21 = vunpack.i.l.bf16 %v780_v6 }
 0x12d   : > { %v395_v29 = vsel %vm394_vm8, %v781_v21, %v782_v20 }
 0x12e   : > { %v369_v7 = vpop.permute.xlu0 %368  ;;  %v785_v8 = vpop.permute.xlu1 %784 }
 0x12f   : > { %v787_v9 = vunpack.i.h.bf16 %v785_v8  ;;  %v786_v10 = vunpack.i.l.bf16 %v785_v8 }
 0x131   : > { %v355_v11 = vsel %vm353_vm6, %v786_v10, %v787_v9  ;;  %v354_v27 = vsel %vm353_vm6, %v348_v4, %v786_v10 }
 0x132   : > { %v823_v12 = vpack.i.bf16 %v787_v9, %v355_v11  ;;  %v775_v13 = vpop.permute.xlu0 %774  ;;  %v790_v14 = vpop.permute.xlu1 %789 }
 0x133   : > { %v777_v15 = vunpack.i.h.bf16 %v775_v13  ;;  %v776_v16 = vunpack.i.l.bf16 %v775_v13  ;;  %v791_v17 = vunpack.i.l.bf16 %v790_v14  ;;  %v792_v25 = vunpack.i.h.bf16 %v790_v14 }
 0x134   : > { %824 = vrot.lane.b32.xlu0 %v823_v12, %s964_s25 }
 0x135   : > { %v343_v18 = vsel %vm341_vm7, %v776_v16, %v777_v15  ;;  %v828_v19 = vpack.i.bf16 %v791_v17, %v771_v62  ;;  %v342_v26 = vsel %vm341_vm7, %v336_v5, %v776_v16  ;;  %v371_v34 = vsel %vm370_vm9, %v791_v17, %v792_v25  ;;  %v220_v62 = vld [vmem:[%s1253_s3] sm:$0xff] }
 0x136   : > { %v818_v22 = vpack.i.bf16 %v777_v15, %v343_v18  ;;  %v381_v23 = vpop.permute.xlu0 %380  ;;  %v795_v24 = vpop.permute.xlu1 %794  ;;  %v838_v30 = vpack.i.bf16 %v354_v27, %v342_v26  ;;  %v372_v35 = vsel %vm370_vm9, %v792_v25, %v369_v7 }
 0x137   : > { %v797_v32 = vunpack.i.h.bf16 %v795_v24  ;;  %v796_v37 = vunpack.i.l.bf16 %v795_v24  ;;  %v843_v38 = vpack.i.bf16 %v372_v35, %v371_v34 }
 0x138   : > { %819 = vrot.lane.b32.xlu1 %v818_v22, %s964_s25  ;;  %829 = vrot.lane.b32.xlu0 %v828_v19, %s964_s25 }
 0x139   : > { %v383_v40 = vsel %vm382_vm10, %v796_v37, %v797_v32  ;;  %v384_v41 = vsel %vm382_vm10, %v797_v32, %v381_v23  ;;  %v853_v47 = vpack.i.bf16 %v781_v21, %v796_v37 }
 0x13a   : > { %v393_v28 = vpop.permute.xlu0 %392  ;;  %v401_v31 = vpop.permute.xlu1 %400  ;;  %v848_v44 = vpack.i.bf16 %v384_v41, %v383_v40 }
 0x13b   : > { %v396_v33 = vsel %vm394_vm8, %v782_v20, %v393_v28 }
 0x13c   : > { %v833_v36 = vpack.i.bf16 %v396_v33, %v395_v29  ;;  %839 = vrot.lane.b32.xlu1 %v838_v30, %s964_s25 }
 0x13e   : > { %834 = vrot.lane.b32.xlu0 %v833_v36, %s964_s25  ;;  %v403_v39 = vpop.permute.xlu0 %402  ;;  %v405_v43 = vpop.permute.xlu1 %404 }
 0x13f   : > { %v407_v42 = vsel %vm406_vm11, %v401_v31, %v403_v39  ;;  %v408_v53 = vsel %vm406_vm11, %v403_v39, %v405_v43 }
 0x140   : > { %844 = vrot.lane.b32.xlu1 %v843_v38, %s964_s25 }
 0x142   : > { %467 = vrot.lane.b32.xlu0 %v407_v42, %s964_s25  ;;  %v805_v45 = vpop.permute.xlu0 %804  ;;  %v800_v46 = vpop.permute.xlu1 %799 }
 0x143   : > { %v807_v50 = vunpack.i.h.bf16 %v805_v45  ;;  %v802_v51 = vunpack.i.h.bf16 %v800_v46  ;;  %v801_v52 = vunpack.i.l.bf16 %v800_v46  ;;  %v806_v54 = vunpack.i.l.bf16 %v805_v45 }
 0x144   : > { %849 = vrot.lane.b32.xlu1 %v848_v44, %s964_s25 }
 0x145   : > { %v474_v58 = vsel %vm313_vm4, %v801_v52, %v802_v51  ;;  %v473_v59 = vsel %vm313_vm4, %v807_v50, %v801_v52 }
 0x146   : > { %465 = vrot.lane.b32.xlu0 %v401_v31, %s964_s25  ;;  %v810_v48 = vpop.permute.xlu0 %809 }
 0x147   : > { %v812_v14 = vunpack.i.h.bf16 %v810_v48  ;;  %v811_v15 = vunpack.i.l.bf16 %v810_v48 }
 0x148   : > { %854 = vrot.lane.b32.xlu1 %v853_v47, %s964_s25 }
 0x149   : > { %v480_v25 = vsel %vm313_vm4, %v811_v15, %v812_v14 }
 0x14a   : > { %v815_v55 = vpop.permute.xlu0 %814 }
 0x14b   : > { %v817_v56 = vunpack.i.h.bf16 %v815_v55  ;;  %v816_v57 = vunpack.i.l.bf16 %v815_v55 }
 0x14c   : > { %469 = vrot.lane.b32.xlu1 %v408_v53, %s964_s25 }
 0x14d   : > { %v472_v60 = vsel %vm313_vm4, %v816_v57, %v817_v56  ;;  %v471_v61 = vsel %vm313_vm4, %v806_v54, %v816_v57 }
 0x14e   : > { %v687_v63 = vpack.c.bf16 %v474_v58, %v472_v60  ;;  %v689_v0 = vpack.c.bf16 %v473_v59, %v471_v61 }
 0x150   : > { %688 = vmatprep.subr.bf16.mxu0 %v687_v63  ;;  %411 = vperm.xlu1 %858, %v220_v62  }
 0x151   : > { %690 = vmatpush1.bf16.msra.mxu0 %v689_v0 }
 0x1a6   : > { %v825_v1 = vpop.permute.xlu0 %824 }
 0x1a7   : > { %v827_v2 = vunpack.i.h.bf16 %v825_v1  ;;  %v826_v3 = vunpack.i.l.bf16 %v825_v1 }
 0x1a9   : > { %v478_v9 = vsel %vm313_vm4, %v826_v3, %v827_v2 }
 0x1aa   : > { %v820_v4 = vpop.permute.xlu1 %819  ;;  %v830_v7 = vpop.permute.xlu0 %829 }
 0x1ab   : > { %v822_v5 = vunpack.i.h.bf16 %v820_v4  ;;  %v821_v6 = vunpack.i.l.bf16 %v820_v4  ;;  %v831_v16 = vunpack.i.l.bf16 %v830_v7  ;;  %v832_v22 = vunpack.i.h.bf16 %v830_v7 }
 0x1ad   : > { %v476_v8 = vsel %vm313_vm4, %v821_v6, %v822_v5  ;;  %v479_v26 = vsel %vm313_vm4, %v831_v16, %v811_v15 }
 0x1ae   : > { %v840_v10 = vpop.permute.xlu1 %839  ;;  %v691_v11 = vpack.c.bf16 %v478_v9, %v476_v8 }
 0x1af   : > { %v842_v12 = vunpack.i.h.bf16 %v840_v10  ;;  %v841_v13 = vunpack.i.l.bf16 %v840_v10 }
 0x1b0   : > { %692 = vmatprep.subr.bf16.mxu0 %v691_v11  ;;  %v835_v19 = vpop.permute.xlu0 %834 }
 0x1b1   : > { %v475_v17 = vsel %vm313_vm4, %v841_v13, %v821_v6  ;;  %v477_v18 = vsel %vm313_vm4, %v842_v12, %v826_v3  ;;  %v837_v27 = vunpack.i.h.bf16 %v835_v19  ;;  %v836_v28 = vunpack.i.l.bf16 %v835_v19 }
 0x1b2   : > { %v845_v20 = vpop.permute.xlu1 %844  ;;  %v693_v21 = vpack.c.bf16 %v477_v18, %v475_v17 }
 0x1b3   : > { %v847_v23 = vunpack.i.h.bf16 %v845_v20  ;;  %v846_v24 = vunpack.i.l.bf16 %v845_v20  ;;  %v486_v37 = vsel %vm313_vm4, %v836_v28, %v837_v27 }
 0x1b4   : > { %694 = vmatpush1.bf16.msra.mxu0 %v693_v21  ;;  %v468_v38 = vpop.permute.xlu0 %467 }
 0x1b5   : > { %v482_v29 = vsel %vm313_vm4, %v846_v24, %v847_v23  ;;  %v481_v30 = vsel %vm313_vm4, %v832_v22, %v846_v24 }
 0x1b6   : > { %v850_v31 = vpop.permute.xlu1 %849  ;;  %v695_v32 = vpack.c.bf16 %v482_v29, %v480_v25  ;;  %v697_v33 = vpack.c.bf16 %v481_v30, %v479_v26 }
 0x1b7   : > { %v852_v34 = vunpack.i.h.bf16 %v850_v31  ;;  %v851_v35 = vunpack.i.l.bf16 %v850_v31 }
 0x1b8   : > { %696 = vmatprep.subr.bf16.mxu0 %v695_v32  ;;  %v466_v48 = vpop.permute.xlu0 %465 }
 0x1b9   : > { %698 = vmatpush1.bf16.msra.mxu0 %v697_v33  ;;  %v484_v36 = vsel %vm313_vm4, %v851_v35, %v852_v34  ;;  %v487_v50 = vsel %vm313_vm4, %v466_v48, %v468_v38 }
 0x1ba   : > { %v855_v39 = vpop.permute.xlu1 %854  ;;  %v699_v40 = vpack.c.bf16 %v486_v37, %v484_v36 }
 0x1bb   : > { %v857_v41 = vunpack.i.h.bf16 %v855_v39  ;;  %v856_v42 = vunpack.i.l.bf16 %v855_v39 }
 0x1bc   : > { %700 = vmatprep.subr.bf16.mxu0 %v699_v40 }
 0x1bd   : > { %v483_v43 = vsel %vm313_vm4, %v856_v42, %v851_v35  ;;  %v485_v44 = vsel %vm313_vm4, %v857_v41, %v836_v28 }
 0x1be   : > { %v470_v45 = vpop.permute.xlu1 %469  ;;  %v701_v46 = vpack.c.bf16 %v485_v44, %v483_v43 }
 0x1bf   : > { %v488_v47 = vsel %vm313_vm4, %v468_v38, %v470_v45 }
 0x1c0   : > { %702 = vmatpush1.bf16.msra.mxu0 %v701_v46 }
 0x1c1   : > { %527 = vmatprep.subr.mxu0 %v488_v47 }
 0x1c4   : > { %528 = vmatpush1.msra.mxu0 %v487_v50 }
 0x1c5   : > { %679 = vmatmul.mubr.msk.f32.vlgmr.msra.gmra.mrb[0].mxu0 %vm507_vm12, %v219_v49 }
 0x1cf   : > { %v412_v51 = vpop.permute.xlu1 %411 }
 0x298   : > { %v577_v52 = vpop.f32.mrb[0].mxu0 }
 0x299   : > { %v578_v53 = vadd.f32 %v577_v52, %v412_v51  ;;  %v579_v54 = vpop.f32.mrb[1].mxu0 }
 0x29a   : > { %v580_v55 = vadd.f32 %v579_v54, %v412_v51 }
 0x29b   : > { %582 = vst [vmem:[%s213_s22] sm:$0xff] %v578_v53 }
 0x29c   : > { %583 = vst [vmem:[%s213_s22 + $0x8] sm:$0xff] %v580_v55 }
 0x29d   : > { %903 = shalt.err (!%p900_p4)
}
 0x29e   : > { %s904_s7 = scalar_lea.hbm %s1206_s30, 256  ;;  %s908_s10 = scalar_lea.hbm %s1254_s4, 512 }
 0x29f   : > { %p905_p5 = scmp.ne.s32.totalorder %s1206_s30, %s904_s7  ;;  %p909_p0 = scmp.lt.u32.totalorder %s1206_s30, %s1254_s4 }
 0x2a0   : > { %p910_p1 = scmp.lt.u32.totalorder %s908_s10, %s904_s7  ;;  %p912_p6 = scmp.lt.u32.totalorder %s904_s7, %s1206_s30 }
 0x2a1   : > { %p906_p8 = pnand %p905_p5, %p1263_p11 }
 0x2a2   : > { %p911_p3 = por %p910_p1, %p909_p0 }
 0x2a3   : > { %p907_p9 = pneg %p906_p8 }
 0x2a4   : > { %p913_p12 = por %p912_p6, %p911_p3 }
 0x2a6   : > { %p914_p13 = pnand %p913_p12, %p907_p9 }
 0x2a8   : > { %917 = shalt.err (!%p914_p13)
}
 0x2a9   : > { %705 = dma.vmem_to_hbm [thread:$0]  (%p1263_p11), %s1208_s23, 256, %s1206_s30, %s585_s19  }
 0x2aa PF: > { %s611_s20 = sand.u32 1, %s944_s15   ;;  %p1264_p7 = scmp.ne.s32.totalorder %s1259_s28, 0 }
 0x2ab   : > { %p1265_p10 = scmp.ge.s32.totalorder %s956_s18, 2  ;;  %s612_s26 = scalar_lea.sflag [#allocation5], %s611_s20 }
 0x2ad   : > { %p712_p2 = pnand %p1265_p10, %p1264_p7 }
 0x2af   : > { %939 = dma.done.wait (!%p712_p2), %s612_s26, 256  }
 0x2b0   : > { %941 = vsyncadd (!%p712_p2), %s612_s26, 4294967040  ;;  %p17_p4 = scmp.ge.s32.totalorder %s1024_s21, 4   ;;  %s1266_s15 = smov %s948_s16 }
 0x2b1   : > { %s1267_s16 = smov %s952_s17  ;;  %s1268_s17 = smov %s1036_s24 }
 0x2b2   : > { %s1269_s18 = smov %s1024_s21  ;;  %19 = sbr.rel (!%p17_p4) target bundleno = 5 (0x5), region = 82 }
 0x2b9   :  { %617 = vsyncpa [#allocation4], 1 }
 0x2ba   :  { %619 = vsyncpa [#allocation4 + $0x1], 1 }
 0x2bb   :  { %620 = vsyncpa [#allocation5], 1 }
 0x2bc   :  { %622 = vsyncpa [#allocation5 + $0x1], 1 }

</bundles_post_ra>
